<compile_context>
chip_gen: v7x
topology: tpu7x:2x2x1
jax: 0.10.0
libtpu: 0.0.40
codegen_flags: <defaults>
</compile_context>

<pallas_src>
import functools

import jax
import jax.numpy as jnp
from jax.experimental import pallas as pl
from jax.experimental.pallas import tpu as pltpu


_TILED_VMEM_LIMIT_BYTES = 32 * 1024 * 1024


# ----------------------------------------------------------------------------
# Hardware-generation parameters
# ----------------------------------------------------------------------------
@functools.lru_cache(maxsize=1)
def _tpu_generation_params():
    """Pick thresholds from the chip's VMEM capacity (proxy for generation)."""
    vmem_bytes = 64 * 1024 * 1024  # conservative default (v7x-like)
    try:
        info = pltpu.get_tpu_info()
        for attr in ("vmem_capacity_bytes", "vmem_size_bytes", "vmem_bytes"):
            v = getattr(info, attr, None)
            if v:
                vmem_bytes = int(v)
                break
    except Exception:
        pass
    if vmem_bytes >= 100 * 1024 * 1024:
        # v5e / v6e: 128 MiB VMEM, one TensorCore per chip.
        return dict(
            fused_slab_limit=24 * 1024 * 1024,
            fused_vmem_limit=100 * 1024 * 1024,
            tile_target=2 * 1024 * 1024,
            n_tc=1,
        )
    # v7x-like: 64 MiB physical VMEM, two TensorCores per chip.
    return dict(
        fused_slab_limit=10 * 1024 * 1024,
        fused_vmem_limit=48 * 1024 * 1024,
        tile_target=6 * 1024 * 1024,
        n_tc=2,
    )


# ----------------------------------------------------------------------------
# Kernels
# ----------------------------------------------------------------------------
def _excite(sum_col, inv_s, w1t_ref, b1_ref, w2_ref, b2_ref):
    """Per-channel sigmoid gate from per-channel spatial sums.

    Intentionally VPU/EUP only (broadcast-multiply + reduce); the matvecs are
    far below one MXU tile — do not "optimize" this onto the MXU.

    sum_col: (C, 1) f32 spatial sums.
    w1t_ref: (C, Cr) = fc1.weight.T    b1_ref: (1, Cr)
    w2_ref : (C, Cr) = fc2.weight      b2_ref: (C, 1)
    returns: (C, 1) f32 gate.
    """
    m_col = sum_col * inv_s                                                   # (C, 1)
    h = jnp.sum(w1t_ref[...] * m_col, axis=0, keepdims=True) + b1_ref[...]    # (1, Cr)
    h = jnp.maximum(h, 0.0)
    g = jnp.sum(w2_ref[...] * h, axis=1, keepdims=True) + b2_ref[...]         # (C, 1)
    return jax.nn.sigmoid(g)


def _fused_packed_kernel(x_ref, w1t_ref, b1_ref, w2_ref, b2_ref, o_ref, *, inv_s):
    # x_ref block: (1, C, R, 128) -> full (8,128) vregs even when C < 8.
    x = x_ref[0]                                             # (C, R, 128)
    xf = x if x.dtype == jnp.float32 else x.astype(jnp.float32)
    part = jnp.sum(xf, axis=1)                               # (C, 128)  VPU adds over rows
    s_col = jnp.sum(part, axis=-1, keepdims=True)            # (C, 1)    one lane fold (XLU)
    g = _excite(s_col, inv_s, w1t_ref, b1_ref, w2_ref, b2_ref)  # (C, 1)
    o_ref[0] = (x * g.astype(x.dtype)[:, :, None]).astype(o_ref.dtype)


def _tile_sum_kernel(x_ref, o_ref):
    # Two-pass path, pass 1: per-tile per-channel sums.  Both grid axes are
    # "parallel" (no serial accumulator); the lane fold happens here so only a
    # tiny (C, 1) block is written back per tile.
    x = x_ref[0]                                             # (C, tr, 128)
    xf = x if x.dtype == jnp.float32 else x.astype(jnp.float32)
    part = jnp.sum(xf, axis=1)                               # (C, 128)
    o_ref[0, 0] = jnp.sum(part, axis=-1, keepdims=True)      # (C, 1)


def _scale_kernel(g_ref, x_ref, o_ref):
    # Two-pass path, pass 2: tiled broadcast scale.
    g = g_ref[0]                                             # (C, 1) f32
    x = x_ref[0]                                             # (C, tr, 128)
    o_ref[0] = (x * g.astype(x.dtype)[:, :, None]).astype(o_ref.dtype)


# ----------------------------------------------------------------------------
# Pallas-call wrappers
# ----------------------------------------------------------------------------
def _se3d_fused_packed(x4, w1t, b1r, w2f, b2c, inv_s, *, vmem_limit):
    B, C, R, _ = x4.shape
    Cr = w1t.shape[1]

    # With a single grid step there is no cross-step overlap to win, so drop
    # to single-buffering on the big slabs (halves VMEM residency).
    big_kwargs = dict(pipeline_mode=pl.Buffered(1)) if B == 1 else {}
    x_spec = pl.BlockSpec((1, C, R, 128), lambda b: (b, 0, 0, 0), **big_kwargs)
    o_spec = pl.BlockSpec((1, C, R, 128), lambda b: (b, 0, 0, 0), **big_kwargs)

    kernel = functools.partial(_fused_packed_kernel, inv_s=inv_s)
    return pl.pallas_call(
        kernel,
        out_shape=jax.ShapeDtypeStruct((B, C, R, 128), x4.dtype),
        grid_spec=pltpu.PrefetchScalarGridSpec(
            num_scalar_prefetch=0,
            grid=(B,),
            in_specs=[
                x_spec,
                pl.BlockSpec((C, Cr), lambda b: (0, 0)),
                pl.BlockSpec((1, Cr), lambda b: (0, 0)),
                pl.BlockSpec((C, Cr), lambda b: (0, 0)),
                pl.BlockSpec((C, 1), lambda b: (0, 0)),
            ],
            out_specs=o_spec,
        ),
        compiler_params=pltpu.CompilerParams(
            dimension_semantics=("parallel",),
            vmem_limit_bytes=vmem_limit,
        ),
    )(x4, w1t, b1r, w2f, b2c)


def _choose_tile_rows(n_rows, n_channels, itemsize, tile_target_bytes, n_tc):
    """Multiple-of-8 tile rows: block stays near the byte target while leaving
    enough grid steps per batch element (>= 2 per TensorCore when possible)."""
    bytes_per_row = n_channels * 128 * itemsize
    cap = max(8, (tile_target_bytes // bytes_per_row) // 8 * 8)
    desired_steps = max(2, 2 * n_tc)
    want = -(-n_rows // desired_steps)           # ceil(n_rows / desired_steps)
    want = max(8, -(-want // 8) * 8)             # round up to a multiple of 8
    return max(8, min(cap, want))


def _se3d_two_pass(x4, w1t, b1r, w2f, b2c, inv_s, *, tile_target, n_tc):
    B, C, R, _ = x4.shape
    Cr = w1t.shape[1]
    itemsize = x4.dtype.itemsize

    tr = _choose_tile_rows(R, C, itemsize, tile_target, n_tc)
    r_pad = -(-R // tr) * tr
    if r_pad != R:
        # Zero rows are harmless for the sum and are sliced off after pass 2.
        x4 = jnp.pad(x4, ((0, 0), (0, 0), (0, r_pad - R), (0, 0)))
    n_t = r_pad // tr

    # Pass 1: per-tile per-channel sums; both grid axes parallel.
    tile_sums = pl.pallas_call(
        _tile_sum_kernel,
        out_shape=jax.ShapeDtypeStruct((B, n_t, C, 1), jnp.float32),
        grid_spec=pltpu.PrefetchScalarGridSpec(
            num_scalar_prefetch=0,
            grid=(B, n_t),
            in_specs=[pl.BlockSpec((1, C, tr, 128), lambda b, t: (b, 0, t, 0))],
            out_specs=pl.BlockSpec((1, 1, C, 1), lambda b, t: (b, t, 0, 0)),
        ),
        compiler_params=pltpu.CompilerParams(
            dimension_semantics=("parallel", "parallel"),
            vmem_limit_bytes=_TILED_VMEM_LIMIT_BYTES,
        ),
    )(x4)

    # Tiny excitation path (B x C) in plain JAX, off the kernels' serial path.
    sums = tile_sums.reshape(B, n_t, C).sum(axis=1)                  # (B, C)
    mean = sums * inv_s
    h = jnp.maximum(mean @ w1t + b1r, 0.0)                           # (B, Cr)
    gate = jax.nn.sigmoid(h @ w2f.T + b2c.reshape(1, C))             # (B, C)
    gate3 = gate.reshape(B, C, 1).astype(jnp.float32)

    # Pass 2: tiled broadcast scale; many parallel steps -> pipelined DMA and
    # useful dual-TensorCore sharding even for B == 1.
    out4 = pl.pallas_call(
        _scale_kernel,
        out_shape=jax.ShapeDtypeStruct((B, C, r_pad, 128), x4.dtype),
        grid_spec=pltpu.PrefetchScalarGridSpec(
            num_scalar_prefetch=0,
            grid=(B, n_t),
            in_specs=[
                pl.BlockSpec((1, C, 1), lambda b, t: (b, 0, 0)),
                pl.BlockSpec((1, C, tr, 128), lambda b, t: (b, 0, t, 0)),
            ],
            out_specs=pl.BlockSpec((1, C, tr, 128), lambda b, t: (b, 0, t, 0)),
        ),
        compiler_params=pltpu.CompilerParams(
            dimension_semantics=("parallel", "parallel"),
            vmem_limit_bytes=_TILED_VMEM_LIMIT_BYTES,
        ),
    )(gate3, x4)
    return out4[:, :, :R, :]


# ----------------------------------------------------------------------------
# Public entry point (matches ChannelSELayer3D.forward)
# ----------------------------------------------------------------------------
def channel_se_layer_3d(x, w1, b1, w2, b2, *, force_two_pass=False, force_fused=False):
    """3-D channel squeeze-and-excitation.

    x : (B, C, D, H, W)
    w1: (Cr, C), b1: (Cr,)   (fc1)
    w2: (C, Cr), b2: (C,)    (fc2)
    """
    B, C, D, H, W = x.shape
    S = D * H * W
    Cr = w1.shape[0]
    inv_s = 1.0 / float(S)

    # Kernel-side weight layouts so both matvecs are pure VPU broadcast-multiply
    # + reduce (no MXU, no in-kernel transposes).
    w1t = jnp.transpose(w1).astype(jnp.float32)      # (C, Cr)
    b1r = b1.reshape(1, Cr).astype(jnp.float32)      # (1, Cr)
    w2f = w2.astype(jnp.float32)                     # (C, Cr)
    b2c = b2.reshape(C, 1).astype(jnp.float32)       # (C, 1)

    params = _tpu_generation_params()

    # Pad flattened spatial axis to a multiple of 128 -> full (8,128) vregs and
    # unmasked stores everywhere (zero padding leaves the spatial sum unchanged).
    s_pad = -(-S // 128) * 128
    xf = x.reshape(B, C, S)
    if s_pad != S:
        xf = jnp.pad(xf, ((0, 0), (0, 0), (0, s_pad - S)))
    R = s_pad // 128
    x4 = xf.reshape(B, C, R, 128)

    slab_bytes = C * R * 128 * x.dtype.itemsize
    # Buffered(1) on the B == 1 fused path halves residency -> 2x slab headroom.
    slab_limit = params["fused_slab_limit"] * (2 if B == 1 else 1)
    use_two_pass = force_two_pass or (
        not force_fused
        and (slab_bytes > slab_limit
             or (params["n_tc"] >= 2 and B < params["n_tc"]))  # keep both TCs busy on v7x
    )

    if use_two_pass:
        out4 = _se3d_two_pass(x4, w1t, b1r, w2f, b2c, inv_s,
                              tile_target=params["tile_target"],
                              n_tc=params["n_tc"])
    else:
        out4 = _se3d_fused_packed(x4, w1t, b1r, w2f, b2c, inv_s,
                                  vmem_limit=params["fused_vmem_limit"])

    return out4.reshape(B, C, R * 128)[:, :, :S].reshape(B, C, D, H, W)


def se3d_reference(x, w1, b1, w2, b2):
    # Pure-JAX reference mirroring the PyTorch forward.
    m = x.mean(axis=(2, 3, 4))                              # (B, C)
    h = jnp.maximum(m @ w1.T + b1, 0.0)                     # (B, Cr)
    g = jax.nn.sigmoid(h @ w2.T + b2)                       # (B, C)
    return x * g[:, :, None, None, None]


if __name__ == "__main__":
    B, C, D, H, W = 2, 4, 16, 16, 16
    reduction_ratio = 2
    Cr = C // reduction_ratio

    key = jax.random.PRNGKey(0)
    kx, kw1, kb1, kw2, kb2, kodd, kb1x = jax.random.split(key, 7)

    x = jax.random.normal(kx, (B, C, D, H, W), dtype=jnp.float32)

    # Deterministic PyTorch-Linear-style init: U(-1/sqrt(fan_in), 1/sqrt(fan_in))
    bnd1 = 1.0 / float(C) ** 0.5
    bnd2 = 1.0 / float(Cr) ** 0.5
    w1 = jax.random.uniform(kw1, (Cr, C), jnp.float32, -bnd1, bnd1)
    b1 = jax.random.uniform(kb1, (Cr,), jnp.float32, -bnd1, bnd1)
    w2 = jax.random.uniform(kw2, (C, Cr), jnp.float32, -bnd2, bnd2)
    b2 = jax.random.uniform(kb2, (C,), jnp.float32, -bnd2, bnd2)

    ref = se3d_reference(x, w1, b1, w2, b2)

    # 1) default dispatch (fused packed path on this small shape)
    out_fused = jax.block_until_ready(channel_se_layer_3d(x, w1, b1, w2, b2))
    assert out_fused.shape == (B, C, D, H, W)
    assert jnp.allclose(out_fused, ref, atol=1e-5, rtol=1e-5), "fused path mismatch"

    # 2) tiled two-pass path (VMEM / dual-TC fallback; forced here to test it)
    out_2p = jax.block_until_ready(
        channel_se_layer_3d(x, w1, b1, w2, b2, force_two_pass=True))
    assert jnp.allclose(out_2p, ref, atol=1e-5, rtol=1e-5), "two-pass path mismatch"

    # 3) odd spatial extents: wrapper zero-pads S to a multiple of 128
    x_odd = jax.random.normal(kodd, (B, C, 5, 6, 7), dtype=jnp.float32)
    ref_odd = se3d_reference(x_odd, w1, b1, w2, b2)
    out_odd = jax.block_until_ready(channel_se_layer_3d(x_odd, w1, b1, w2, b2))
    assert jnp.allclose(out_odd, ref_odd, atol=1e-5, rtol=1e-5), "padded path mismatch"

    # 4) B == 1: default dispatch (two-pass on dual-TC chips) and forced fused
    #    path with single-buffered (Buffered(1)) slabs.
    x1 = jax.random.normal(kb1x, (1, C, 8, 8, 8), dtype=jnp.float32)
    ref1 = se3d_reference(x1, w1, b1, w2, b2)
    out1_auto = jax.block_until_ready(channel_se_layer_3d(x1, w1, b1, w2, b2))
    assert jnp.allclose(out1_auto, ref1, atol=1e-5, rtol=1e-5), "B=1 auto mismatch"
    out1_fused = jax.block_until_ready(
        channel_se_layer_3d(x1, w1, b1, w2, b2, force_fused=True))
    assert jnp.allclose(out1_fused, ref1, atol=1e-5, rtol=1e-5), "B=1 fused mismatch"

    print("KERNEL_OK")
</pallas_src>

<mosaic_0001>
module attributes {stable_mosaic.version = 11 : i64} {
  func.func @_fused_packed_kernel(%arg0: i32, %arg1: memref<1x4x32x128xf32, #tpu.memory_space<vmem>>, %arg2: memref<4x2xf32, #tpu.memory_space<vmem>>, %arg3: memref<1x2xf32, #tpu.memory_space<vmem>>, %arg4: memref<4x2xf32, #tpu.memory_space<vmem>>, %arg5: memref<4x1xf32, #tpu.memory_space<vmem>>, %arg6: memref<1x4x32x128xf32, #tpu.memory_space<vmem>>) attributes {dimension_semantics = [#tpu.dimension_semantics<parallel>], iteration_bounds = array<i64: 2>, scalar_prefetch = 0 : i64, scratch_operands = 0 : i64, tpu.core_type = #tpu.core_type<tc>, window_params = [{transform_indices = @transform_0, window_bounds = array<i64: 1, 4, 32, 128>}, {pipeline_mode = #tpu.pipeline_mode<synchronous>, transform_indices = @transform_1, window_bounds = array<i64: 4, 2>}, {pipeline_mode = #tpu.pipeline_mode<synchronous>, transform_indices = @transform_2, window_bounds = array<i64: 1, 2>}, {pipeline_mode = #tpu.pipeline_mode<synchronous>, transform_indices = @transform_3, window_bounds = array<i64: 4, 2>}, {pipeline_mode = #tpu.pipeline_mode<synchronous>, transform_indices = @transform_4, window_bounds = array<i64: 4, 1>}, {transform_indices = @transform_5, window_bounds = array<i64: 1, 4, 32, 128>}]} {
    %c0 = arith.constant 0 : index
    %c0_0 = arith.constant 0 : index
    %c0_1 = arith.constant 0 : index
    %c0_2 = arith.constant 0 : index
    %0 = vector.load %arg1[%c0, %c0_0, %c0_1, %c0_2] : memref<1x4x32x128xf32, #tpu.memory_space<vmem>>, vector<1x4x32x128xf32>
    %1 = vector.shape_cast %0 : vector<1x4x32x128xf32> to vector<4x32x128xf32>
    %cst = arith.constant dense<0.000000e+00> : vector<4x128xf32>
    %2 = vector.multi_reduction <add>, %1, %cst [1] : vector<4x32x128xf32> to vector<4x128xf32>
    %cst_3 = arith.constant dense<0.000000e+00> : vector<4xf32>
    %3 = vector.multi_reduction <add>, %2, %cst_3 [1] : vector<4x128xf32> to vector<4xf32>
    %4 = vector.shape_cast %3 : vector<4xf32> to vector<4x1xf32>
    %cst_4 = arith.constant 2.44140625E-4 : f32
    %5 = vector.broadcast %cst_4 : f32 to vector<4x1xf32>
    %6 = arith.mulf %4, %5 : vector<4x1xf32>
    %c0_5 = arith.constant 0 : index
    %c0_6 = arith.constant 0 : index
    %7 = vector.load %arg2[%c0_5, %c0_6] : memref<4x2xf32, #tpu.memory_space<vmem>>, vector<4x2xf32>
    %8 = vector.broadcast %6 : vector<4x1xf32> to vector<4x2xf32>
    %9 = arith.mulf %7, %8 : vector<4x2xf32>
    %cst_7 = arith.constant dense<0.000000e+00> : vector<2xf32>
    %10 = vector.multi_reduction <add>, %9, %cst_7 [0] : vector<4x2xf32> to vector<2xf32>
    %11 = vector.shape_cast %10 : vector<2xf32> to vector<1x2xf32>
    %c0_8 = arith.constant 0 : index
    %c0_9 = arith.constant 0 : index
    %12 = vector.load %arg3[%c0_8, %c0_9] : memref<1x2xf32, #tpu.memory_space<vmem>>, vector<1x2xf32>
    %13 = arith.addf %11, %12 : vector<1x2xf32>
    %cst_10 = arith.constant 0.000000e+00 : f32
    %14 = vector.broadcast %cst_10 : f32 to vector<1x2xf32>
    %15 = arith.maximumf %13, %14 : vector<1x2xf32>
    %c0_11 = arith.constant 0 : index
    %c0_12 = arith.constant 0 : index
    %16 = vector.load %arg4[%c0_11, %c0_12] : memref<4x2xf32, #tpu.memory_space<vmem>>, vector<4x2xf32>
    %17 = vector.broadcast %15 : vector<1x2xf32> to vector<4x2xf32>
    %18 = arith.mulf %16, %17 : vector<4x2xf32>
    %cst_13 = arith.constant dense<0.000000e+00> : vector<4xf32>
    %19 = vector.multi_reduction <add>, %18, %cst_13 [1] : vector<4x2xf32> to vector<4xf32>
    %20 = vector.shape_cast %19 : vector<4xf32> to vector<4x1xf32>
    %c0_14 = arith.constant 0 : index
    %c0_15 = arith.constant 0 : index
    %21 = vector.load %arg5[%c0_14, %c0_15] : memref<4x1xf32, #tpu.memory_space<vmem>>, vector<4x1xf32>
    %22 = arith.addf %20, %21 : vector<4x1xf32>
    %23 = arith.negf %22 : vector<4x1xf32>
    %24 = math.exp %23 : vector<4x1xf32>
    %cst_16 = arith.constant 1.000000e+00 : f32
    %25 = vector.broadcast %cst_16 : f32 to vector<4x1xf32>
    %26 = arith.addf %25, %24 : vector<4x1xf32>
    %27 = arith.divf %25, %26 : vector<4x1xf32>
    %28 = vector.shape_cast %27 : vector<4x1xf32> to vector<4x1x1xf32>
    %29 = vector.broadcast %28 : vector<4x1x1xf32> to vector<4x32x128xf32>
    %30 = arith.mulf %1, %29 : vector<4x32x128xf32>
    %c0_17 = arith.constant 0 : index
    %c0_18 = arith.constant 0 : index
    %c0_19 = arith.constant 0 : index
    %c0_20 = arith.constant 0 : index
    %31 = vector.load %arg6[%c0_17, %c0_18, %c0_19, %c0_20] : memref<1x4x32x128xf32, #tpu.memory_space<vmem>>, vector<1x4x32x128xf32>
    %32 = vector.shape_cast %31 : vector<1x4x32x128xf32> to vector<4x32x128xf32>
    %33 = vector.shape_cast %30 : vector<4x32x128xf32> to vector<1x4x32x128xf32>
    tpu.vector_store %arg6[%c0_17, %c0_18, %c0_19, %c0_20], %33 {strides = array<i32>} : memref<1x4x32x128xf32, #tpu.memory_space<vmem>>, vector<1x4x32x128xf32>,
    return
  }
  func.func @transform_0(%arg0: i32) -> (i32, i32, i32, i32) {
    %c0_i32 = arith.constant 0 : i32
    %c0_i32_0 = arith.constant 0 : i32
    %c0_i32_1 = arith.constant 0 : i32
    %c0_i32_2 = arith.constant 0 : i32
    return %arg0, %c0_i32, %c0_i32_0, %c0_i32_1 : i32, i32, i32, i32
  }
  func.func @transform_1(%arg0: i32) -> (i32, i32) {
    %c0_i32 = arith.constant 0 : i32
    %c0_i32_0 = arith.constant 0 : i32
    %c0_i32_1 = arith.constant 0 : i32
    return %c0_i32, %c0_i32_0 : i32, i32
  }
  func.func @transform_2(%arg0: i32) -> (i32, i32) {
    %c0_i32 = arith.constant 0 : i32
    %c0_i32_0 = arith.constant 0 : i32
    %c0_i32_1 = arith.constant 0 : i32
    return %c0_i32, %c0_i32_0 : i32, i32
  }
  func.func @transform_3(%arg0: i32) -> (i32, i32) {
    %c0_i32 = arith.constant 0 : i32
    %c0_i32_0 = arith.constant 0 : i32
    %c0_i32_1 = arith.constant 0 : i32
    return %c0_i32, %c0_i32_0 : i32, i32
  }
  func.func @transform_4(%arg0: i32) -> (i32, i32) {
    %c0_i32 = arith.constant 0 : i32
    %c0_i32_0 = arith.constant 0 : i32
    %c0_i32_1 = arith.constant 0 : i32
    return %c0_i32, %c0_i32_0 : i32, i32
  }
  func.func @transform_5(%arg0: i32) -> (i32, i32, i32, i32) {
    %c0_i32 = arith.constant 0 : i32
    %c0_i32_0 = arith.constant 0 : i32
    %c0_i32_1 = arith.constant 0 : i32
    %c0_i32_2 = arith.constant 0 : i32
    return %arg0, %c0_i32, %c0_i32_0, %c0_i32_1 : i32, i32, i32, i32
  }
}

</mosaic_0001>

<bundles_post_ra>
// kernel: tpu_custom_call.1
= control target key start
LH: loop header
LB: loop body
LE: loop exit
PB: predicated region body
PF: predicated region fallthrough
CT: control target
= control target key end

     0   :  { %10 = vsyncpa [#allocation3], 0  ;;  %s991_s0 = inlined_call_operand.hbm [shape: f32[2,4,32,128], index: 0, kind: input, shape index: {}]   ;;  %s992_s1 = inlined_call_operand.vmem [shape: f32[4,2], index: 1, kind: input, shape index: {}]   ;;  %s993_s2 = inlined_call_operand.vmem [shape: f32[1,2], index: 2, kind: input, shape index: {}]   ;;  %s994_s3 = inlined_call_operand.vmem [shape: f32[4,2], index: 3, kind: input, shape index: {}]   ;;  %s995_s4 = inlined_call_operand.vmem [shape: f32[4,1], index: 4, kind: input, shape index: {}]   ;;  %s996_s5 = inlined_call_operand.hbm [shape: f32[2,4,32,128], index: 5, kind: output, shape index: {}]  }
   0x1   :  { %12 = vsyncpa [#allocation3 + $0x1], 0 }
   0x2   :  { %13 = vsyncpa [#allocation4], 0 }
   0x3   :  { %15 = vsyncpa [#allocation4 + $0x1], 0  ;;  %s728_s18 = smov 0   ;;  %s730_s19 = smov 0  }
   0x4   :  { %s732_s20 = smov 0   ;;  %s734_s21 = smov 0  }
   0x5 LB: > { %s749_s22 = sadd.s32 4294967295, %s688_s21   ;;  %s517_s23 = sadd.s32 4294967294, %s688_s21   ;;  %s688_s21 = sphi %s734_s21, %s1009_s21   ;;  %s684_s20 = sphi %s732_s20, %s1008_s20   ;;  %s680_s19 = sphi %s730_s19, %s1007_s19   ;;  %s676_s18 = sphi %s728_s18, %s1006_s18  }
   0x6   : > { %s753_s24 = sadd.s32 1, %s688_s21   ;;  %s28_s25 = sadd.s32 1, %s684_s20 }
   0x7   : > { %s25_s26 = ssub.s32 %s688_s21, %s753_s24  ;;  %p35_p0 = scmp.ne.s32.totalorder %s684_s20, %s680_s19 }
   0x8   : > { %p26_p1 = scmp.eq.s32.totalorder %s25_s26, 0  ;;  %p36_p2 = scmp.eq.s32.totalorder %s688_s21, 0 }
   0x9   : > { %p41_p3 = scmp.ne.s32.totalorder %s680_s19, %s676_s18  ;;  %p42_p4 = scmp.eq.s32.totalorder %s749_s22, 0 }
   0xa   : > { %s765_s27 = scalar_select %p26_p1, %s684_s20, %s28_s25  }
   0xb   : > { %p767_p5 = por %p36_p2, %p35_p0  ;;  %p771_p6 = por %p42_p4, %p41_p3 }
   0xc   : > { %p149_p7 = scmp.eq.s32.totalorder %s749_s22, 1  ;;  %p155_p8 = scmp.eq.s32.totalorder %s517_s23, 1 }
   0xd   : > { %p546_p10 = scmp.lt.s32.totalorder %s688_s21, 2  ;;  %s187_s7 = sand.u32 1, %s684_s20  }
   0xe   : > { %p778_p11 = por %p149_p7, %p35_p0  ;;  %p782_p12 = por %p155_p8, %p41_p3 }
   0xf   : > { %s532_s8 = sshll.u32 %s688_s21, 11  ;;  %s520_s9 = sshll.u32 %s187_s7, 7 }
  0x10   : > { %s1000_s30 = scalar_select %p778_p11, 1, 0 }
  0x11   : > { %s1001_s6 = scalar_select %p782_p12, 1, 0 }
  0x12   : > { %s791_s12 = scalar_lea.hbm %s991_s0, %s532_s8  ;;  %s191_s13 = scalar_lea.vmem [#allocation2], %s520_s9 }
  0x13   : > { %s198_s14 = sshll.u32 %s191_s13, 4  ;;  %p795_p13 = pnand %p546_p10, %p767_p5  ;;  %s799_s14 = int_to_ptr.vmem [resolvable:$true] %s198_s14 }
  0x14   : > { %s801_s16 = scalar_lea.sflag [#allocation3], %s187_s7  ;;  %s592_s17 = scalar_lea.hbm %s791_s12, 2048 }
  0x15   : > { %p593_p0 = scmp.ne.s32.totalorder %s791_s12, %s592_s17  ;;  %p594_p1 = pneg %p795_p13 }
  0x16   : > { %s597_s26 = scalar_lea.hbm %s991_s0, 4096  ;;  %p598_p4 = scmp.lt.u32.totalorder %s791_s12, %s991_s0 }
  0x17   : > { %p595_p2 = pnand %p594_p1, %p593_p0  ;;  %p599_p5 = scmp.lt.u32.totalorder %s597_s26, %s592_s17 }
  0x18   : > { %p601_p8 = scmp.lt.u32.totalorder %s592_s17, %s791_s12 }
  0x19   : > { %p596_p3 = pneg %p595_p2  ;;  %p600_p7 = por %p599_p5, %p598_p4 }
  0x1b   : > { %p602_p10 = por %p601_p8, %p600_p7 }
  0x1d   : > { %p603_p9 = pnand %p602_p10, %p596_p3 }
  0x1f   : > { %606 = shalt.err (!%p603_p9)
}
  0x20   : > { %s607_s7 = scalar_lea.vmem %s799_s14, 2048  ;;  %s690_s9 = smov [#allocation2]  }
  0x21   : > { %p608_p0 = scmp.ne.s32.totalorder %s799_s14, %s607_s7  ;;  %s612_s10 = sshll.u32 %s690_s9, 4  ;;  %s613_s10 = int_to_ptr.vmem [resolvable:$false] %s612_s10 }
  0x22   : > { %s614_s11 = scalar_lea.vmem %s613_s10, 4096  ;;  %p615_p11 = scmp.lt.s32.totalorder %s799_s14, %s613_s10 }
  0x23   : > { %p610_p2 = pnand %p608_p0, %p594_p1  ;;  %p616_p4 = scmp.lt.s32.totalorder %s614_s11, %s607_s7 }
  0x25   : > { %p611_p12 = pneg %p610_p2  ;;  %p617_p5 = por %p616_p4, %p615_p11 }
  0x27   : > { %p618_p7 = pnand %p617_p5, %p611_p12 }
  0x29   : > { %621 = shalt.err (!%p618_p7)
}
  0x2a   : > { %s691_s13 = smov 128   ;;  %s692_s17 = smov 8  }
  0x2b   : > { %541 = dma.hbm_to_vmem [thread:$0]  (!%p795_p13), %s791_s12, 2048, %s799_s14, %s801_s16, %s691_s13, %s691_s13, %s692_s17  }
  0x2c   : > { %p523_p9 = scmp.ge.s32.totalorder %s688_s21, 1  ;;  %p206_p1 = scmp.lt.s32.totalorder %s688_s21, 3 }
  0x2e   : > { %p207_p3 = pnand %p523_p9, %p206_p1 }
  0x2f   : > { %s832_s23 = sand.u32 (!%p207_p3), 1, %s680_s19  }
  0x30   : > { %210 = sbr.rel (%p207_p3) target bundleno = 579 (0x243), region = 40  ;;  %s524_s25 = sshll.u32 (!%p207_p3), %s832_s23, 7 }
  0x31   : > { %s213_s26 = scalar_lea.sflag (!%p207_p3), [#allocation3], %s832_s23  ;;  %s216_s28 = scalar_lea.vmem (!%p207_p3), [#allocation2], %s524_s25 }
  0x37   : > { %667 = dma.done.wait (%p771_p6), %s213_s26, 2048  }
  0x38   : > { %669 = vsyncadd (%p771_p6), %s213_s26, 4294965248  ;;  %v842_v0 = vld [vmem:[%s216_s28] sm:$0xff]  ;;  %v844_v1 = vld [vmem:[%s216_s28 + $0x8] sm:$0xff]  ;;  %vm299_vm0 = vcmask 1041409   ;;  %vm301_vm1 = vcmask 1042434   ;;  %vm303_vm2 = vcmask 1043459  }
  0x39   : > { %v846_v2 = vld [vmem:[%s216_s28 + $0x10] sm:$0xff]  ;;  %v848_v3 = vld [vmem:[%s216_s28 + $0x20] sm:$0xff]  ;;  %v850_v4 = vld [vmem:[%s216_s28 + $0x28] sm:$0xff]  ;;  %v259_v5 = vadd.f32 %v844_v1, %v842_v0  ;;  %vm306_vm3 = vcmask 1043456   ;;  %vm313_vm4 = vcmask 11264   ;;  %s910_s10 = scalar_lea.vmem [#allocation5], %s524_s25 }
  0x3a   : > { %v854_v6 = vld [vmem:[%s216_s28 + $0x18] sm:$0xff]  ;;  %v856_v7 = vld [vmem:[%s216_s28 + $0x30] sm:$0xff]  ;;  %v858_v8 = vld [vmem:[%s216_s28 + $0x40] sm:$0xff]  ;;  %v268_v9 = vadd.f32 %v850_v4, %v848_v3  ;;  %s533_s11 = sshll.u32 %s749_s22, 11  ;;  %s444_s13 = sshll.u32 %s910_s10, 4  ;;  %s939_s13 = int_to_ptr.vmem [resolvable:$true] %s444_s13 }
  0x3b   : > { %v862_v10 = vld [vmem:[%s216_s28 + $0x38] sm:$0xff]  ;;  %v864_v11 = vld [vmem:[%s216_s28 + $0x48] sm:$0xff]  ;;  %v866_v12 = vld [vmem:[%s216_s28 + $0x50] sm:$0xff]  ;;  %v260_v13 = vadd.f32 %v259_v5, %v846_v2  ;;  %v325_v5 = vlaneseq  ;;  %s937_s26 = scalar_lea.hbm %s996_s5, %s533_s11  ;;  %s431_s22 = scalar_lea.sflag [#allocation4], %s832_s23 }
  0x3c   : > { %v869_v14 = vld [vmem:[%s216_s28 + $0x60] sm:$0xff]  ;;  %v871_v15 = vld [vmem:[%s216_s28 + $0x68] sm:$0xff]  ;;  %v873_v16 = vld [vmem:[%s216_s28 + $0x70] sm:$0xff]  ;;  %v269_v17 = vadd.f32 %v268_v9, %v856_v7  ;;  %v277_v18 = vadd.f32 %v864_v11, %v858_v8  ;;  %p1003_p11 = scmp.ne.s32.totalorder %s1000_s30, 0  ;;  %s695_s29 = smov [#allocation5]  }
  0x3d   : > { %v878_v19 = vld [vmem:[%s216_s28 + $0x58] sm:$0xff]  ;;  %v261_v20 = vadd.f32 %v260_v13, %v854_v6  ;;  %v286_v21 = vadd.f32 %v871_v15, %v869_v14  ;;  %v311_v56 = vld [vmem:[%s992_s1] sm:$0xf]  ;;  %s626_s12 = sshll.u32 %s695_s29, 4  ;;  %s627_s12 = int_to_ptr.vmem [resolvable:$false] %s626_s12 }
  0x3e   : > { %v883_v22 = vld [vmem:[%s216_s28 + $0x78] sm:$0xff]  ;;  %v270_v23 = vadd.f32 %v269_v17, %v862_v10  ;;  %v278_v24 = vadd.f32 %v277_v18, %v866_v12  ;;  %v326_v17 = vshrl.u32 %v325_v5, 7  ;;  %v321_v18 = vld [vmem:[%s993_s2] sm:$0x1]  ;;  %s622_s28 = scalar_lea.vmem %s939_s13, 2048  ;;  %s628_s14 = scalar_lea.vmem %s627_s12, 4096 }
  0x3f   : > { %v262_v25 = vrot.slane %v261_v20, 4  ;;  %v287_v26 = vadd.f32 %v286_v21, %v873_v16  ;;  %p623_p6 = scmp.ne.s32.totalorder %s939_s13, %s622_s28  ;;  %p629_p8 = scmp.lt.s32.totalorder %s939_s13, %s627_s12 }
  0x40   : > { %v271_v27 = vrot.slane %v270_v23, 4  ;;  %v279_v28 = vadd.f32 %v278_v24, %v878_v19  ;;  %p630_p10 = scmp.lt.s32.totalorder %s628_s14, %s622_s28 }
  0x41   : > { %v263_v29 = vadd.f32 %v262_v25, %v261_v20  ;;  %v288_v30 = vadd.f32 %v287_v26, %v883_v22  ;;  %v324_v25 = vld [vmem:[%s994_s3] sm:$0xf]  ;;  %p624_p12 = pnand %p623_p6, %p1003_p11 }
  0x42   : > { %v272_v31 = vadd.f32 %v271_v27, %v270_v23  ;;  %v280_v32 = vrot.slane %v279_v28, 4  ;;  %v327_v23 = vsub.s32 0, %v326_v17  ;;  %p631_p0 = por %p630_p10, %p629_p8 }
  0x43   : > { %v264_v33 = vrot.slane %v263_v29, 2  ;;  %v289_v34 = vrot.slane %v288_v30, 4  ;;  %p625_p13 = pneg %p624_p12 }
  0x44   : > { %v273_v35 = vrot.slane %v272_v31, 2  ;;  %v281_v36 = vadd.f32 %v280_v32, %v279_v28 }
  0x45   : > { %v265_v37 = vadd.f32 %v264_v33, %v263_v29  ;;  %v290_v38 = vadd.f32 %v289_v34, %v288_v30  ;;  %v693_v29 = vmov 0   ;;  %v333_v30 = vld [vmem:[%s995_s4] sm:$0xf]  ;;  %p632_p2 = pnand %p631_p0, %p625_p13 }
  0x46   : > { %v274_v39 = vadd.f32 %v273_v35, %v272_v31  ;;  %v282_v40 = vrot.slane %v281_v36, 2  ;;  %586 = vset.pattern.permute.xlu1 %v693_v29  ;;  %587 = vset.pattern.permute.xlu0 %v693_v29 }
  0x47   : > { %v266_v41 = vrot.slane %v265_v37, 1  ;;  %v291_v42 = vrot.slane %v290_v38, 2 }
  0x48   : > { %v275_v43 = vrot.slane %v274_v39, 1  ;;  %v283_v44 = vadd.f32 %v282_v40, %v281_v36  ;;  %v694_v36 = vmov 1966171168  }
  0x49   : > { %v267_v45 = vadd.f32 %v266_v41, %v265_v37  ;;  %v292_v46 = vadd.f32 %v291_v42, %v290_v38  ;;  %v343_v37 = vunpack.c.l.s4 %v694_v36 }
  0x4a   : > { %v276_v47 = vadd.f32 %v275_v43, %v274_v39  ;;  %v284_v48 = vrot.slane %v283_v44, 1 }
  0x4b   : > { %v293_v49 = vrot.slane %v292_v46, 1  ;;  %v344_v38 = vunpack.c.0.s8 %v343_v37 }
  0x4c   : > { %v285_v50 = vadd.f32 %v284_v48, %v283_v44  ;;  %v300_v51 = vsel %vm299_vm0, %v276_v47, %v267_v45 }
  0x4d   : > { %v294_v52 = vadd.f32 %v293_v49, %v292_v46  ;;  %v347_v39 = vsub.s32 %v344_v38, %v326_v17 }
  0x4e   : > { %v302_v53 = vsel %vm301_vm1, %v285_v50, %v300_v51 }
  0x4f   : > { %v304_v54 = vsel %vm303_vm2, %v294_v52, %v302_v53 }
  0x50   : > { %v307_v55 = vsel %vm306_vm3, %v304_v54, 0.0 }
  0x51   : > { %308 = vadd.xlane.f32.xlu0 %v307_v55 }
  0xde   : > { %v309_v57 = vpop.xlane.xlu0 %308 }
  0xdf   : > { %v310_v58 = vmul.f32 0.00024414063, %v309_v57 }
  0xe1   : > { %v312_v59 = vmul.f32 %v311_v56, %v310_v58 }
  0xe3   : > { %v314_v60 = vsel %vm313_vm4, %v312_v59, 0.0 }
  0xe4   : > { %v315_v61 = vrot.slane %v314_v60, 4 }
  0xe6   : > { %v316_v62 = vadd.f32 %v315_v61, %v314_v60 }
  0xe8   : > { %v317_v63 = vrot.slane %v316_v62, 2 }
  0xea   : > { %v318_v9 = vadd.f32 %v317_v63, %v316_v62 }
  0xec   : > { %v319_v13 = vrot.slane %v318_v9, 1 }
  0xee   : > { %v320_v20 = vadd.f32 %v319_v13, %v318_v9 }
  0xf0   : > { %v322_v21 = vadd.f32 %v321_v18, %v320_v20 }
  0xf2   : > { %v323_v24 = vmax.f32 %v322_v21, 0.0 }
  0xf4   : > { %v328_v26 = vrot.slane %v323_v24, %v327_v23 }
  0xf6   : > { %v329_v27 = vmul.f32 %v328_v26, %v324_v25 }
  0xf8   : > { %v330_v28 = vsel %vm313_vm4, %v329_v27, 0.0 }
  0xf9   : > { %331 = vadd.xlane.f32.xlu0 %v330_v28 }
 0x186   : > { %v332_v31 = vpop.xlane.xlu0 %331 }
 0x187   : > { %v334_v32 = vadd.f32 %v333_v30, %v332_v31 }
 0x189   : > { %v526_v33 = vmul.f32 -1.442695, %v334_v32 }
 0x18b   : > { %588 = vpow2.f32 %v526_v33 }
 0x195   : > { %v589_v34 = vpop.eup %588 }
 0x196   : > { %v338_v35 = vadd.f32 1.0, %v589_v34 }
 0x198   : > { %590 = vrcp.f32 %v338_v35 }
 0x1a2   : > { %v591_v40 = vpop.eup %590 }
 0x1a3   : > { %v348_v41 = vrot.slane %v591_v40, %v347_v39 }
 0x1a5   : > { %v356_v42 = vrot.slane %v348_v41, %v347_v39  ;;  %v349_v43 = vcombine.high %v348_v41, %v348_v41 }
 0x1a7   : > { %v369_v44 = vrot.slane %v356_v42, %v327_v23  ;;  %v364_v45 = vcombine.high %v356_v42, %v356_v42  ;;  %v363_v46 = vrot.slane %v349_v43, %v347_v39 }
 0x1a9   : > { %383 = vperm.xlu1 %586, %v369_v44   ;;  %v377_v47 = vrot.slane %v364_v45, %v327_v23  ;;  %v373_v48 = vrot.slane %v363_v46, %v327_v23  ;;  %v365_v49 = vcombine.high %v363_v46, %v363_v46 }
 0x1ab   : > { %391 = vperm.xlu0 %587, %v377_v47   ;;  %v381_v50 = vrot.slane %v365_v49, %v327_v23 }
 0x1ad   : > { %387 = vperm.xlu1 %586, %v373_v48  }
 0x1b1   : > { %395 = vperm.xlu1 %586, %v381_v50  }
 0x228   : > { %v384_v51 = vpop.permute.xlu1 %383 }
 0x229   : > { %v398_v52 = vmul.f32 %v384_v51, %v842_v0  ;;  %v399_v53 = vmul.f32 %v384_v51, %v844_v1  ;;  %v400_v54 = vmul.f32 %v384_v51, %v846_v2  ;;  %v401_v55 = vmul.f32 %v384_v51, %v854_v6 }
 0x22a   : > { %v392_v56 = vpop.permute.xlu0 %391 }
 0x22b   : > { %414 = vst [vmem:[%s910_s10] sm:$0xff] %v398_v52  ;;  %415 = vst [vmem:[%s910_s10 + $0x8] sm:$0xff] %v399_v53  ;;  %v406_v0 = vmul.f32 %v392_v56, %v858_v8  ;;  %v407_v1 = vmul.f32 %v392_v56, %v864_v11  ;;  %v408_v2 = vmul.f32 %v392_v56, %v866_v12 }
 0x22c   : > { %416 = vst [vmem:[%s910_s10 + $0x10] sm:$0xff] %v400_v54  ;;  %417 = vst [vmem:[%s910_s10 + $0x18] sm:$0xff] %v401_v55  ;;  %v409_v6 = vmul.f32 %v392_v56, %v878_v19  ;;  %v388_v57 = vpop.permute.xlu1 %387 }
 0x22d   : > { %422 = vst [vmem:[%s910_s10 + $0x40] sm:$0xff] %v406_v0  ;;  %423 = vst [vmem:[%s910_s10 + $0x48] sm:$0xff] %v407_v1  ;;  %v402_v58 = vmul.f32 %v388_v57, %v848_v3  ;;  %v403_v59 = vmul.f32 %v388_v57, %v850_v4  ;;  %v404_v8 = vmul.f32 %v388_v57, %v856_v7 }
 0x22e   : > { %424 = vst [vmem:[%s910_s10 + $0x50] sm:$0xff] %v408_v2  ;;  %425 = vst [vmem:[%s910_s10 + $0x58] sm:$0xff] %v409_v6  ;;  %v405_v11 = vmul.f32 %v388_v57, %v862_v10 }
 0x22f   : > { %418 = vst [vmem:[%s910_s10 + $0x20] sm:$0xff] %v402_v58  ;;  %419 = vst [vmem:[%s910_s10 + $0x28] sm:$0xff] %v403_v59 }
 0x230   : > { %420 = vst [vmem:[%s910_s10 + $0x30] sm:$0xff] %v404_v8  ;;  %421 = vst [vmem:[%s910_s10 + $0x38] sm:$0xff] %v405_v11  ;;  %v396_v12 = vpop.permute.xlu1 %395 }
 0x231   : > { %v410_v3 = vmul.f32 %v396_v12, %v869_v14  ;;  %v411_v4 = vmul.f32 %v396_v12, %v871_v15  ;;  %v412_v7 = vmul.f32 %v396_v12, %v873_v16  ;;  %v413_v10 = vmul.f32 %v396_v12, %v883_v22 }
 0x233   : > { %426 = vst [vmem:[%s910_s10 + $0x60] sm:$0xff] %v410_v3  ;;  %427 = vst [vmem:[%s910_s10 + $0x68] sm:$0xff] %v411_v4 }
 0x234   : > { %428 = vst [vmem:[%s910_s10 + $0x70] sm:$0xff] %v412_v7  ;;  %429 = vst [vmem:[%s910_s10 + $0x78] sm:$0xff] %v413_v10 }
 0x235   : > { %635 = shalt.err (!%p632_p2)
}
 0x236   : > { %s636_s15 = scalar_lea.hbm %s937_s26, 2048  ;;  %s640_s7 = scalar_lea.hbm %s996_s5, 4096 }
 0x237   : > { %p637_p4 = scmp.ne.s32.totalorder %s937_s26, %s636_s15  ;;  %p641_p9 = scmp.lt.u32.totalorder %s937_s26, %s996_s5 }
 0x238   : > { %p642_p1 = scmp.lt.u32.totalorder %s640_s7, %s636_s15  ;;  %p644_p6 = scmp.lt.u32.totalorder %s636_s15, %s937_s26 }
 0x239   : > { %p638_p5 = pnand %p637_p4, %p1003_p11 }
 0x23a   : > { %p643_p3 = por %p642_p1, %p641_p9 }
 0x23b   : > { %p639_p7 = pneg %p638_p5 }
 0x23c   : > { %p645_p12 = por %p644_p6, %p643_p3 }
 0x23e   : > { %p646_p13 = pnand %p645_p12, %p639_p7 }
 0x240   : > { %649 = shalt.err (!%p646_p13)
}
 0x241   : > { %s696_s11 = smov 128   ;;  %s697_s17 = smov 8  }
 0x242   : > { %536 = dma.vmem_to_hbm [thread:$0]  (%p1003_p11), %s939_s13, 2048, %s937_s26, %s431_s22, %s696_s11, %s696_s11, %s697_s17  }
 0x243 PF: > { %s459_s25 = sand.u32 1, %s676_s18   ;;  %p1004_p8 = scmp.ne.s32.totalorder %s1001_s6, 0 }
 0x244   : > { %p1005_p10 = scmp.ge.s32.totalorder %s688_s21, 2  ;;  %s460_s28 = scalar_lea.sflag [#allocation4], %s459_s25 }
 0x246   : > { %p543_p0 = pnand %p1005_p10, %p1004_p8 }
 0x248   : > { %671 = dma.done.wait (!%p543_p0), %s460_s28, 2048  }
 0x249   : > { %673 = vsyncadd (!%p543_p0), %s460_s28, 4294965248  ;;  %p18_p2 = scmp.ge.s32.totalorder %s753_s24, 4   ;;  %s1006_s18 = smov %s680_s19 }
 0x24a   : > { %s1007_s19 = smov %s684_s20  ;;  %s1008_s20 = smov %s765_s27 }
 0x24b   : > { %s1009_s21 = smov %s753_s24  ;;  %20 = sbr.rel (!%p18_p2) target bundleno = 5 (0x5), region = 85 }
 0x252   :  { %465 = vsyncpa [#allocation3], 1 }
 0x253   :  { %467 = vsyncpa [#allocation3 + $0x1], 1 }
 0x254   :  { %468 = vsyncpa [#allocation4], 1 }
 0x255   :  { %470 = vsyncpa [#allocation4 + $0x1], 1 }

</bundles_post_ra>
